<compile_context>
chip_gen: v7x
topology: tpu7x:2x2x1
jax: 0.10.0
libtpu: 0.0.40
codegen_flags: <defaults>
</compile_context>

<pallas_src>
import functools

import jax
import jax.numpy as jnp
from jax.experimental import pallas as pl
from jax.experimental.pallas import tpu as pltpu


_INV_SQRT2 = 0.7071067811865476
_SQRT_2_OVER_PI = 0.7978845608028654


def _gelu_math(xf, approximate):
    if approximate:
        # tanh form: ~6 VALU ops + 1 EUP tanh (EUP slot otherwise idle).
        inner = _SQRT_2_OVER_PI * (xf + 0.044715 * xf * xf * xf)
        return 0.5 * xf * (1.0 + jnp.tanh(inner))
    # exact erf form (matches torch.nn.functional.gelu default)
    return 0.5 * xf * (1.0 + jax.lax.erf(xf * _INV_SQRT2))


def _gelu_kernel(x_ref, o_ref, *, approximate):
    # compute in f32 for accuracy (v5e VPU/EUP have no bf16 anyway), cast back
    xf = x_ref[...].astype(jnp.float32)
    o_ref[...] = _gelu_math(xf, approximate).astype(o_ref.dtype)


def _device_kind():
    try:
        return jax.devices()[0].device_kind.lower()
    except Exception:
        return ""


def _round_up(a, b):
    return -(-a // b) * b


def _gelu_2d(x2d, *, approximate, target_block_bytes, sublane, two_tc):
    """Run the streaming GELU kernel on a lane-dense (rows, lane) view."""
    rows, lane = x2d.shape
    itemsize = jnp.dtype(x2d.dtype).itemsize

    # Row tile targeting ~target_block_bytes per block, rounded to the dtype's
    # native sublane multiple.
    tr_target = max(
        sublane, (target_block_bytes // (lane * itemsize)) // sublane * sublane
    )

    if rows <= sublane:
        # Single tiny block; block == full array dims satisfies the (8,128) rule.
        tr = rows
    else:
        # On 2-TC chips, cap the tile so we get at least 2 grid steps and both
        # TensorCores stream their share of HBM.  Single-TC chips: 1 step is
        # fine (per-step overhead beats a pointless split).
        min_steps = 2 if two_tc else 1
        want = _round_up(-(-rows // min_steps), sublane)
        tr = min(tr_target, want)

    grid = (pl.cdiv(rows, tr),)

    return pl.pallas_call(
        functools.partial(_gelu_kernel, approximate=approximate),
        out_shape=jax.ShapeDtypeStruct((rows, lane), x2d.dtype),
        grid_spec=pl.GridSpec(
            grid=grid,
            in_specs=[pl.BlockSpec((tr, lane), lambda i: (i, 0))],
            out_specs=pl.BlockSpec((tr, lane), lambda i: (i, 0)),
        ),
        compiler_params=pltpu.CompilerParams(
            dimension_semantics=("parallel",)
        ),
    )(x2d)


def gelu_pallas(x, *, approximate=False, target_block_bytes=None):
    """Elementwise GELU via Pallas TPU kernels.

    approximate=False (default): exact erf form, matches torch F.gelu default.
    approximate=True: tanh form (EUP path), matches torch gelu(approximate='tanh').
    """
    orig_shape = x.shape
    orig_dtype = x.dtype
    n = x.size
    if n == 0:
        return x

    itemsize = jnp.dtype(orig_dtype).itemsize
    # Native sublane multiple: 8 (f32), 16 (bf16/f16), 32 (int8/fp8).
    sublane = max(8, 32 // max(itemsize, 1))

    kind = _device_kind()
    two_tc = "v7" in kind
    if target_block_bytes is None:
        # v5e: ~2 MiB (scoped VMEM default is only 16 MiB); v6e/v7x: ~4 MiB
        # (4 double-buffered buffers = 16 MiB, under the 32 MiB scoped default).
        target_block_bytes = (2 << 20) if "v5" in kind else (4 << 20)

    flat = x.reshape(-1)

    # Copy-free fast path: widest lane width (multiple of 128) dividing n.
    lane = None
    for cand in (2048, 1024, 512, 256, 128):
        if n % cand == 0:
            lane = cand
            break

    if lane is not None:
        out2d = _gelu_2d(
            flat.reshape(n // lane, lane),
            approximate=approximate,
            target_block_bytes=target_block_bytes,
            sublane=sublane,
            two_tc=two_tc,
        )
        return out2d.reshape(orig_shape)

    # Ragged path (n % 128 != 0): no jnp.pad of the input.  Stream the aligned
    # prefix through the main kernel; the sub-128-element tail goes through a
    # tiny single-block kernel (block == full array dims is legal).
    lane = 128
    n_main = (n // lane) * lane
    n_tail = n - n_main

    parts = []
    if n_main:
        main = _gelu_2d(
            flat[:n_main].reshape(n_main // lane, lane),
            approximate=approximate,
            target_block_bytes=target_block_bytes,
            sublane=sublane,
            two_tc=two_tc,
        )
        parts.append(main.reshape(-1))
    if n_tail:
        tail2d = flat[n_main:].reshape(1, n_tail)
        tail = pl.pallas_call(
            functools.partial(_gelu_kernel, approximate=approximate),
            out_shape=jax.ShapeDtypeStruct((1, n_tail), orig_dtype),
        )(tail2d)
        parts.append(tail.reshape(-1))

    out_flat = parts[0] if len(parts) == 1 else jnp.concatenate(parts)
    # TODO(synk): a fully copy-free ragged path needs a manual-DMA kernel over
    # the flat HBM ref (memory_space=pl.ANY) or output donation at the call
    # site; the concatenate above still materializes one extra output pass.
    return out_flat.reshape(orig_shape)


if __name__ == "__main__":
    key = jax.random.PRNGKey(0)

    # Shape consistent with a generic activation input (B, C, H, W).
    x = jax.random.normal(key, (2, 4, 16, 16), dtype=jnp.float32)
    y = gelu_pallas(x)
    jax.block_until_ready(y)
    y_ref = jax.nn.gelu(x, approximate=False)
    assert y.shape == x.shape and y.dtype == x.dtype
    assert jnp.allclose(y, y_ref, atol=1e-5, rtol=1e-5)

    # Ragged (non-multiple-of-128) path.
    x2 = jax.random.normal(jax.random.PRNGKey(1), (3, 5, 7), dtype=jnp.float32)
    y2 = gelu_pallas(x2)
    jax.block_until_ready(y2)
    y2_ref = jax.nn.gelu(x2, approximate=False)
    assert y2.shape == x2.shape and y2.dtype == x2.dtype
    assert jnp.allclose(y2, y2_ref, atol=1e-5, rtol=1e-5)

    # bf16 path (sublane rounding = 16) + tanh-form flag.
    x3 = jax.random.normal(jax.random.PRNGKey(2), (4, 8, 128), dtype=jnp.bfloat16)
    y3 = gelu_pallas(x3)
    jax.block_until_ready(y3)
    y3_ref = jax.nn.gelu(x3.astype(jnp.float32), approximate=False).astype(jnp.bfloat16)
    assert y3.shape == x3.shape and y3.dtype == x3.dtype
    assert jnp.allclose(y3.astype(jnp.float32), y3_ref.astype(jnp.float32),
                        atol=2e-2, rtol=2e-2)

    y4 = gelu_pallas(x, approximate=True)
    jax.block_until_ready(y4)
    y4_ref = jax.nn.gelu(x, approximate=True)
    assert jnp.allclose(y4, y4_ref, atol=1e-5, rtol=1e-5)

    print("KERNEL_OK")
</pallas_src>

<mosaic_0001>
module attributes {stable_mosaic.version = 11 : i64} {
  func.func @_gelu_kernel(%arg0: i32, %arg1: memref<1x2048xf32, #tpu.memory_space<vmem>>, %arg2: memref<1x2048xf32, #tpu.memory_space<vmem>>) attributes {dimension_semantics = [#tpu.dimension_semantics<parallel>], iteration_bounds = array<i64: 1>, scalar_prefetch = 0 : i64, scratch_operands = 0 : i64, tpu.core_type = #tpu.core_type<tc>, window_params = [{transform_indices = @transform_0, window_bounds = array<i64: 1, 2048>}, {transform_indices = @transform_1, window_bounds = array<i64: 1, 2048>}]} {
    %c0 = arith.constant 0 : index
    %c0_0 = arith.constant 0 : index
    %0 = vector.load %arg1[%c0, %c0_0] : memref<1x2048xf32, #tpu.memory_space<vmem>>, vector<1x2048xf32>
    %cst = arith.constant 5.000000e-01 : f32
    %1 = vector.broadcast %cst : f32 to vector<1x2048xf32>
    %2 = arith.mulf %1, %0 : vector<1x2048xf32>
    %cst_1 = arith.constant 0.707106769 : f32
    %3 = vector.broadcast %cst_1 : f32 to vector<1x2048xf32>
    %4 = arith.mulf %0, %3 : vector<1x2048xf32>
    %5 = math.erf %4 : vector<1x2048xf32>
    %cst_2 = arith.constant 1.000000e+00 : f32
    %6 = vector.broadcast %cst_2 : f32 to vector<1x2048xf32>
    %7 = arith.addf %6, %5 : vector<1x2048xf32>
    %8 = arith.mulf %2, %7 : vector<1x2048xf32>
    %c0_3 = arith.constant 0 : index
    %c0_4 = arith.constant 0 : index
    %9 = vector.load %arg2[%c0_3, %c0_4] : memref<1x2048xf32, #tpu.memory_space<vmem>>, vector<1x2048xf32>
    tpu.vector_store %arg2[%c0_3, %c0_4], %8 {strides = array<i32>} : memref<1x2048xf32, #tpu.memory_space<vmem>>, vector<1x2048xf32>,
    return
  }
  func.func @transform_0(%arg0: i32) -> (i32, i32) {
    %c0_i32 = arith.constant 0 : i32
    %c0_i32_0 = arith.constant 0 : i32
    return %arg0, %c0_i32 : i32, i32
  }
  func.func @transform_1(%arg0: i32) -> (i32, i32) {
    %c0_i32 = arith.constant 0 : i32
    %c0_i32_0 = arith.constant 0 : i32
    return %arg0, %c0_i32 : i32, i32
  }
}

</mosaic_0001>

<bundles_post_ra>
// kernel: tpu_custom_call.1
= control target key start
LH: loop header
LB: loop body
LE: loop exit
PB: predicated region body
PF: predicated region fallthrough
CT: control target
= control target key end

     0   :  { %6 = vsyncpa [#allocation3], 0  ;;  %s140_s0 = inlined_call_operand.hbm [shape: f32[1,2048], index: 0, kind: input, shape index: {}]   ;;  %s141_s1 = inlined_call_operand.hbm [shape: f32[1,2048], index: 1, kind: output, shape index: {}]  }
   0x1   :  { %7 = vsyncpa [#allocation4], 0  ;;  %s104_s6 = smov [#allocation2]   ;;  %s56_s10 = scalar_lea.hbm %s140_s0, 256 }
   0x2   :  { %s14_s7 = sshll.u32 %s104_s6, 4  ;;  %p57_p0 = scmp.ne.s32.totalorder %s140_s0, %s56_s10  ;;  %s15_s7 = int_to_ptr.vmem [resolvable:$true] %s14_s7 }
   0x3   :  { %p60_p1 = scmp.lt.u32.totalorder %s56_s10, %s140_s0 }
   0x5   :  { %p62_p2 = pnand %p60_p1, %p57_p0 }
   0x7   :  { %65 = shalt.err (!%p62_p2)
}
   0x8   :  { %s66_s15 = scalar_lea.vmem %s15_s7, 256  ;;  %p71_p4 = scmp.lt.s32.totalorder %s15_s7, %s15_s7 }
   0x9   :  { %p67_p3 = scmp.ne.s32.totalorder %s15_s7, %s66_s15  ;;  %p72_p5 = scmp.lt.s32.totalorder %s66_s15, %s66_s15 }
   0xb   :  { %p73_p6 = por %p72_p5, %p71_p4 }
   0xd   :  { %p74_p7 = pnand %p73_p6, %p67_p3 }
   0xf   :  { %77 = shalt.err (!%p74_p7)
}
  0x10   :  { %17 = dma.hbm_to_vmem [thread:$0]  %s140_s0, 256, %s15_s7, [#allocation3]  }
  0x11   :  { %100 = dma.done.wait [#allocation3], 256  }
  0x12   :  { %101 = vsyncadd [#allocation3], 4294967040  ;;  %v21_v0 = vld [vmem:[#allocation2] sm:$0xff]  ;;  %v22_v1 = vld [vmem:[#allocation2 + $0x8] sm:$0xff]  ;;  %s105_s18 = smov [#allocation5]  }
  0x13   :  { %v25_v2 = vmul.f32 0.70710677, %v21_v0  ;;  %v26_v3 = vmul.f32 0.70710677, %v22_v1  ;;  %v23_v4 = vmul.f32 0.5, %v21_v0  ;;  %v24_v6 = vmul.f32 0.5, %v22_v1 }
  0x14   :  { %s41_s19 = sshll.u32 %s105_s18, 4  ;;  %s42_s19 = int_to_ptr.vmem [resolvable:$true] %s41_s19 }
  0x15   :  { %52 = verf.f32 %v25_v2  ;;  %s78_s0 = scalar_lea.vmem %s42_s19, 256  ;;  %p83_p9 = scmp.lt.s32.totalorder %s42_s19, %s42_s19 }
  0x16   :  { %54 = verf.f32 %v26_v3  ;;  %p79_p8 = scmp.ne.s32.totalorder %s42_s19, %s78_s0  ;;  %p84_p10 = scmp.lt.s32.totalorder %s78_s0, %s78_s0 }
  0x18   :  { %p85_p11 = por %p84_p10, %p83_p9 }
  0x1a   :  { %p86_p12 = pnand %p85_p11, %p79_p8 }
  0x1f   :  { %v53_v5 = vpop.eup %52 }
  0x20   :  { %v55_v7 = vpop.eup %54  ;;  %v29_v8 = vadd.f32 1.0, %v53_v5 }
  0x21   :  { %v30_v9 = vadd.f32 1.0, %v55_v7 }
  0x22   :  { %v31_v10 = vmul.f32 %v29_v8, %v23_v4 }
  0x23   :  { %v32_v11 = vmul.f32 %v30_v9, %v24_v6 }
  0x24   :  { %33 = vst [vmem:[#allocation5] sm:$0xff] %v31_v10 }
  0x25   :  { %34 = vst [vmem:[#allocation5 + $0x8] sm:$0xff] %v32_v11 }
  0x26   :  { %89 = shalt.err (!%p86_p12)
}
  0x27   :  { %s90_s22 = scalar_lea.hbm %s141_s1, 256 }
  0x28   :  { %p91_p13 = scmp.ne.s32.totalorder %s141_s1, %s90_s22  ;;  %p94_p0 = scmp.lt.u32.totalorder %s90_s22, %s141_s1 }
  0x2a   :  { %p96_p1 = pnand %p94_p0, %p91_p13 }
  0x2c   :  { %99 = shalt.err (!%p96_p1)
}
  0x2d   :  { %44 = dma.vmem_to_hbm [thread:$0]  %s42_s19, 256, %s141_s1, [#allocation4]  }
  0x2e   :  { %102 = dma.done.wait [#allocation4], 256  }
  0x2f   :  { %103 = vsyncadd [#allocation4], 4294967040 }
  0x30   :  { %48 = vsyncpa [#allocation3], 1 }
  0x31   :  { %49 = vsyncpa [#allocation4], 1 }

</bundles_post_ra>
